<compile_context>
chip_gen: v7x
topology: tpu7x:2x2x1
jax: 0.10.0
libtpu: 0.0.40
codegen_flags: <defaults>
</compile_context>

<pallas_src>
import functools
import math

import jax
import jax.numpy as jnp
from jax import lax
from jax.experimental import pallas as pl
from jax.experimental.pallas import tpu as pltpu


# ----------------------------------------------------------------------------
# Kernel body
# ----------------------------------------------------------------------------
def _mp_kernel(project_first, dinv_ref, z_ref, x_ref, adj_ref, *rest):
    # dinv_ref: (1, 1, TM)   f32     d_i^{-1/2} for this tile's nodes
    # z_ref:    (1, C, Np)   mm      pre-scaled feats Y (C=F_in) or P=W_agg^T Y (C=F_out)
    # x_ref:    (1, F_in, TM) mm     raw feature tile (self term)
    # adj_ref:  (1, TM, Np)  stored  adjacency rows for this node tile (any dtype)
    # ws_ref:   (F_out, F_in) mm     W_self^T
    # wa_ref:   (F_out, F_in) mm     W_agg^T (only when not project_first)
    # b_ref:    (F_out, 1)   f32     bias column
    # o_ref:    (1, F_out, TM)       lane-dense output tile
    if project_first:
        ws_ref, b_ref, o_ref = rest
        wa_ref = None
    else:
        ws_ref, wa_ref, b_ref, o_ref = rest

    z = z_ref[0]                                    # [C, Np]
    adj = adj_ref[0]                                # [TM, Np] (stored dtype)
    if adj.dtype != z.dtype:
        # Per-tile upcast of the narrow adjacency; overlaps under the DMA.
        adj = adj.astype(z.dtype)

    # agg[c, m] = sum_j z[c, j] * adj[m, j]   (contraction over last dims; no
    # transpose materialized, no symmetry assumption).
    agg = lax.dot_general(
        z, adj,
        dimension_numbers=(((1,), (1,)), ((), ())),
        preferred_element_type=jnp.float32)         # [C, TM] f32

    # Row-scale by d_i^{-1/2} for this tile's nodes.
    agg = agg * dinv_ref[0]                         # broadcast [1, TM]

    # Self term.
    out = jnp.dot(ws_ref[...], x_ref[0],
                  preferred_element_type=jnp.float32)   # [F_out, TM] f32

    if project_first:
        out = out + agg                             # agg already in F_out space
    else:
        out = out + jnp.dot(wa_ref[...], agg.astype(wa_ref.dtype),
                            preferred_element_type=jnp.float32)

    out = out + rest[-2][...] if False else out     # (kept simple below)
    out = out + b_ref[...]                          # bias broadcast [F_out, 1]
    o_ref[0] = out.astype(o_ref.dtype)


# ----------------------------------------------------------------------------
# Pipeline-mode capability probe (pl.Buffered(1) on grid-invariant inputs)
# ----------------------------------------------------------------------------
_BUFFERED1_SUPPORTED = None


def _buffered1_supported():
    """One-time probe: does this jax/Mosaic accept pipeline_mode=pl.Buffered(1)?"""
    global _BUFFERED1_SUPPORTED
    if _BUFFERED1_SUPPORTED is None:
        ok = False
        try:
            spec = pl.BlockSpec((8, 128), lambda i: (0, 0),
                                pipeline_mode=pl.Buffered(1))

            def _probe(x_ref, o_ref):
                o_ref[...] = x_ref[...]

            fn = pl.pallas_call(
                _probe,
                out_shape=jax.ShapeDtypeStruct((8, 128), jnp.float32),
                grid=(1,),
                in_specs=[spec],
                out_specs=pl.BlockSpec((8, 128), lambda i: (0, 0)))
            jax.jit(fn).lower(jnp.zeros((8, 128), jnp.float32)).compile()
            ok = True
        except Exception:
            ok = False
        _BUFFERED1_SUPPORTED = ok
    return _BUFFERED1_SUPPORTED


# ----------------------------------------------------------------------------
# Tiling / VMEM planning
# ----------------------------------------------------------------------------
def _vmem_budget():
    """~80% of detected per-core VMEM, capped at ~104 MiB (v5e/v6e headroom)."""
    cap = 64 << 20  # conservative fallback (v7x per-TC physical VMEM)
    try:
        info = pltpu.get_tpu_info()
        cap = int(getattr(info, "vmem_capacity_bytes", cap) or cap)
    except Exception:
        pass
    return int(max(16 << 20, min(cap * 0.8, 104 << 20)))


def _fits(tm, n_pad, f_in, f_out, c_agg, adj_isz, mm_isz, budget, single_buf):
    zbuf = 1 if single_buf else 2
    use = 2 * tm * n_pad * adj_isz              # adjacency row tile (double-buffered)
    use += zbuf * c_agg * n_pad * mm_isz        # resident pre-scaled/projected feats
    use += 2 * f_in * tm * mm_isz               # raw feature tile (self term)
    use += 2 * f_out * tm * 4                   # output tile
    use += 2 * tm * 4                           # d^{-1/2} tile
    use += zbuf * (2 * f_in * f_out * mm_isz + f_out * 4)   # weights + bias
    use += 2 << 20                              # compiler-internal headroom
    return use <= budget


def _plan_tiling(N, B, f_in, f_out, c_agg, adj_isz, mm_isz, budget, single_buf):
    """Returns (node_tile, padded_N)."""
    if N <= 128:
        return N, N                              # single full tile, no padding
    n_pad = -(-N // 128) * 128                   # minimal (8,128)-clean padding
    cands = [t for t in (1024, 512, 256, 128) if t <= n_pad and n_pad % t == 0]
    if B == 1:                                   # v7x megacore: keep >= 2 steps
        multi = [t for t in cands if n_pad // t >= 2]
        cands = multi or cands
    for t in cands:
        if _fits(t, n_pad, f_in, f_out, c_agg, adj_isz, mm_isz, budget, single_buf):
            return t, n_pad
    return cands[-1], n_pad                      # smallest tile; budget is approximate


# ----------------------------------------------------------------------------
# One-time GSO pre-pass (cache across layers, analog of addGSO)
# ----------------------------------------------------------------------------
def precompute_gso(adj, *, store_dtype=None):
    """Single adjacency read: degree normalization + optional narrow-storage cast.

    Returns (adj_stored, d_inv_sqrt[B,1,N]).  bf16 storage is exact for 0/1
    adjacencies and halves the kernel's dominant HBM stream.
    """
    deg = jnp.maximum(jnp.sum(adj, axis=2, dtype=jnp.float32), 1e-6)
    d_inv_sqrt = lax.rsqrt(deg)[:, None, :]
    adj_stored = adj if store_dtype is None else adj.astype(store_dtype)
    return adj_stored, d_inv_sqrt


# ----------------------------------------------------------------------------
# Forward wrapper
# ----------------------------------------------------------------------------
def message_passing_forward(node_feats, adj, w_self, w_agg, bias=None, *,
                            d_inv_sqrt=None, matmul_dtype=None, node_tile=None,
                            activation=None, single_buffer_invariants=True):
    """node_feats: [B, F_in, N], adj: [B, N, N] (any stored dtype) -> [B, F_out, N]."""
    B, F_in, N = node_feats.shape
    F_out = w_self.shape[1]
    out_dtype = node_feats.dtype
    mm_dtype = jnp.dtype(matmul_dtype) if matmul_dtype is not None else jnp.dtype(out_dtype)

    # Degree normalization: computed here only if the caller did not cache it.
    if d_inv_sqrt is None:
        deg = jnp.maximum(jnp.sum(adj, axis=2, dtype=jnp.float32), 1e-6)
        d_inv_sqrt = lax.rsqrt(deg)
    d_inv_sqrt = d_inv_sqrt.reshape(B, 1, N).astype(jnp.float32)

    project_first = F_out < F_in                 # put the smaller dim on the adjacency matmul
    c_agg = F_out if project_first else F_in
    adj_isz = jnp.dtype(adj.dtype).itemsize
    mm_isz = mm_dtype.itemsize

    use_single = bool(single_buffer_invariants) and _buffered1_supported()
    budget = _vmem_budget()

    if node_tile is not None:
        tm = int(node_tile)
        n_pad = -(-N // tm) * tm
    else:
        tm, n_pad = _plan_tiling(N, B, F_in, F_out, c_agg, adj_isz, mm_isz,
                                 budget, use_single)
    assert tm == n_pad or tm % 128 == 0, "node_tile must be a multiple of 128 (or full N)"
    assert n_pad % tm == 0

    # Zero-pad the node dimension (padded rows/cols are inert: zero adjacency,
    # zero features; padded outputs are sliced off below).
    if n_pad != N:
        pad = n_pad - N
        adj = jnp.pad(adj, ((0, 0), (0, pad), (0, pad)))
        node_feats = jnp.pad(node_feats, ((0, 0), (0, 0), (0, pad)))
        d_inv_sqrt = jnp.pad(d_inv_sqrt, ((0, 0), (0, 0), (0, pad)))

    x_mm = node_feats.astype(mm_dtype)
    # Column scaling hoisted out of the per-tile body (O(F_in*N) per batch).
    y = node_feats.astype(jnp.float32) * d_inv_sqrt
    if project_first:
        # P = W_agg^T @ Y once per batch -> adjacency matmul M-dim = F_out.
        z = jnp.einsum('fo,bfn->bon', w_agg.astype(jnp.float32), y).astype(mm_dtype)
    else:
        z = y.astype(mm_dtype)
    C = z.shape[1]

    ws_t = w_self.T.astype(mm_dtype)             # [F_out, F_in]
    wa_t = w_agg.T.astype(mm_dtype)              # [F_out, F_in]
    bias_col = (jnp.zeros((F_out, 1), jnp.float32) if bias is None
                else bias.reshape(F_out, 1).astype(jnp.float32))

    def _spec(shape, index_map, *, single=False):
        if single and use_single:
            return pl.BlockSpec(shape, index_map, pipeline_mode=pl.Buffered(1))
        return pl.BlockSpec(shape, index_map)

    in_specs = [
        _spec((1, 1, tm), lambda b, i: (b, 0, i)),                 # d_i^{-1/2} tile
        _spec((1, C, n_pad), lambda b, i: (b, 0, 0), single=True), # Z (or P), resident
        _spec((1, F_in, tm), lambda b, i: (b, 0, i)),              # raw feature tile
        _spec((1, tm, n_pad), lambda b, i: (b, i, 0)),             # adjacency rows
        _spec((F_out, F_in), lambda b, i: (0, 0), single=True),    # W_self^T
    ]
    args = [d_inv_sqrt, z, x_mm, adj, ws_t]
    if not project_first:
        in_specs.append(_spec((F_out, F_in), lambda b, i: (0, 0), single=True))
        args.append(wa_t)
    in_specs.append(_spec((F_out, 1), lambda b, i: (0, 0), single=True))
    args.append(bias_col)

    out = pl.pallas_call(
        functools.partial(_mp_kernel, project_first),
        out_shape=jax.ShapeDtypeStruct((B, F_out, n_pad), out_dtype),
        grid_spec=pltpu.PrefetchScalarGridSpec(
            num_scalar_prefetch=0,
            grid=(B, n_pad // tm),
            in_specs=in_specs,
            out_specs=pl.BlockSpec((1, F_out, tm), lambda b, i: (b, 0, i)),
        ),
        compiler_params=pltpu.CompilerParams(
            dimension_semantics=("parallel", "parallel"),
            vmem_limit_bytes=budget),
    )(*args)

    if n_pad != N:
        out = out[:, :, :N]
    if activation is not None:                   # module default is None -> identity
        out = activation(out)
    return out


# ----------------------------------------------------------------------------
# Demo / correctness check
# ----------------------------------------------------------------------------
def _xavier_uniform(key, fan_in, fan_out, dtype=jnp.float32):
    limit = math.sqrt(6.0 / (fan_in + fan_out))
    return jax.random.uniform(key, (fan_in, fan_out), dtype=dtype,
                              minval=-limit, maxval=limit)


def _reference(node_feats, adj, w_self, w_agg, bias):
    deg = jnp.maximum(adj.sum(axis=2), 1e-6)
    d_is = deg ** -0.5
    adj_n = adj * d_is[:, :, None] * d_is[:, None, :]
    x_p = jnp.transpose(node_feats, (0, 2, 1))
    ref = x_p @ w_self + (adj_n @ x_p) @ w_agg
    if bias is not None:
        ref = ref + bias
    return jnp.transpose(ref, (0, 2, 1))


if __name__ == "__main__":
    key = jax.random.PRNGKey(0)
    k_ws, k_wa, k_x, k_a, k_ws2, k_wa2, k_x2, k_a2 = jax.random.split(key, 8)

    # ---- Config 1: F_out > F_in, tiny graph (single full node tile) ----
    B, F_in, F_out, N = 2, 8, 32, 16
    W_self = _xavier_uniform(k_ws, F_in, F_out)
    W_agg = _xavier_uniform(k_wa, F_in, F_out)
    bias = jnp.zeros((F_out,), jnp.float32)
    node_feats = jax.random.normal(k_x, (B, F_in, N), jnp.float32)
    a_rand = jax.random.uniform(k_a, (B, N, N))
    adj = (a_rand > 0.5).astype(jnp.float32)
    adj = jnp.maximum(adj, jnp.transpose(adj, (0, 2, 1)))     # symmetric 0/1 GSO

    ref = _reference(node_feats, adj, W_self, W_agg, bias)

    # f32 path (exact semantics of the torch module).
    out = message_passing_forward(node_feats, adj, W_self, W_agg, bias)
    out = jax.block_until_ready(out)
    assert out.shape == (B, F_out, N)
    assert jnp.allclose(out, ref, atol=1e-4, rtol=1e-4)

    # Cached GSO + bf16-stored (exact 0/1) adjacency: no wrapper-side adjacency
    # passes inside the forward; compute stays f32 -> matches the f32 reference.
    adj_bf16, dinv = precompute_gso(adj, store_dtype=jnp.bfloat16)
    out2 = message_passing_forward(node_feats, adj_bf16, W_self, W_agg, bias,
                                   d_inv_sqrt=dinv)
    out2 = jax.block_until_ready(out2)
    assert jnp.allclose(out2, ref, atol=1e-4, rtol=1e-4)

    # Full bf16 MXU path (bf16 operands, f32 accumulation): loose tolerance.
    out3 = message_passing_forward(node_feats, adj_bf16, W_self, W_agg, bias,
                                   d_inv_sqrt=dinv, matmul_dtype=jnp.bfloat16)
    out3 = jax.block_until_ready(out3)
    assert jnp.allclose(out3, ref, atol=1e-1, rtol=5e-2)

    # ---- Config 2: F_out < F_in (project-first path) + node padding / tiling ----
    B2, F_in2, F_out2, N2 = 2, 32, 8, 160
    W_self2 = _xavier_uniform(k_ws2, F_in2, F_out2)
    W_agg2 = _xavier_uniform(k_wa2, F_in2, F_out2)
    bias2 = jnp.zeros((F_out2,), jnp.float32)
    node_feats2 = jax.random.normal(k_x2, (B2, F_in2, N2), jnp.float32)
    a2 = (jax.random.uniform(k_a2, (B2, N2, N2)) > 0.7).astype(jnp.float32)
    adj2 = jnp.maximum(a2, jnp.transpose(a2, (0, 2, 1)))

    ref2 = _reference(node_feats2, adj2, W_self2, W_agg2, bias2)
    out4 = message_passing_forward(node_feats2, adj2, W_self2, W_agg2, bias2,
                                   node_tile=128)
    out4 = jax.block_until_ready(out4)
    assert out4.shape == (B2, F_out2, N2)
    assert jnp.allclose(out4, ref2, atol=1e-3, rtol=1e-3)

    print("KERNEL_OK")
</pallas_src>

<mosaic_0001>
module attributes {stable_mosaic.version = 11 : i64} {
  func.func @_mp_kernel(%arg0: i32, %arg1: i32, %arg2: memref<1x1x16xf32, #tpu.memory_space<vmem>>, %arg3: memref<1x8x16xf32, #tpu.memory_space<vmem>>, %arg4: memref<1x8x16xf32, #tpu.memory_space<vmem>>, %arg5: memref<1x16x16xf32, #tpu.memory_space<vmem>>, %arg6: memref<32x8xf32, #tpu.memory_space<vmem>>, %arg7: memref<32x8xf32, #tpu.memory_space<vmem>>, %arg8: memref<32x1xf32, #tpu.memory_space<vmem>>, %arg9: memref<1x32x16xf32, #tpu.memory_space<vmem>>) attributes {dimension_semantics = [#tpu.dimension_semantics<parallel>, #tpu.dimension_semantics<parallel>], iteration_bounds = array<i64: 2, 1>, scalar_prefetch = 0 : i64, scratch_operands = 0 : i64, tpu.core_type = #tpu.core_type<tc>, window_params = [{transform_indices = @transform_0, window_bounds = array<i64: 1, 1, 16>}, {transform_indices = @transform_1, window_bounds = array<i64: 1, 8, 16>}, {transform_indices = @transform_2, window_bounds = array<i64: 1, 8, 16>}, {transform_indices = @transform_3, window_bounds = array<i64: 1, 16, 16>}, {pipeline_mode = #tpu.pipeline_mode<synchronous>, transform_indices = @transform_4, window_bounds = array<i64: 32, 8>}, {pipeline_mode = #tpu.pipeline_mode<synchronous>, transform_indices = @transform_5, window_bounds = array<i64: 32, 8>}, {pipeline_mode = #tpu.pipeline_mode<synchronous>, transform_indices = @transform_6, window_bounds = array<i64: 32, 1>}, {transform_indices = @transform_7, window_bounds = array<i64: 1, 32, 16>}]} {
    %c0 = arith.constant 0 : index
    %c0_0 = arith.constant 0 : index
    %c0_1 = arith.constant 0 : index
    %0 = vector.load %arg3[%c0, %c0_0, %c0_1] : memref<1x8x16xf32, #tpu.memory_space<vmem>>, vector<1x8x16xf32>
    %1 = vector.shape_cast %0 : vector<1x8x16xf32> to vector<8x16xf32>
    %c0_2 = arith.constant 0 : index
    %c0_3 = arith.constant 0 : index
    %c0_4 = arith.constant 0 : index
    %2 = vector.load %arg5[%c0_2, %c0_3, %c0_4] : memref<1x16x16xf32, #tpu.memory_space<vmem>>, vector<1x16x16xf32>
    %3 = vector.shape_cast %2 : vector<1x16x16xf32> to vector<16x16xf32>
    %cst = arith.constant dense<0.000000e+00> : vector<8x16xf32>
    %4 = tpu.matmul %1, %3, %cst {dimension_numbers = #tpu.dot_dimension_numbers<[1], [1], [0], [0], [0, 0, 1, 0], [], []>} : vector<8x16xf32>, vector<16x16xf32>, vector<8x16xf32> -> vector<8x16xf32>
    %c0_5 = arith.constant 0 : index
    %c0_6 = arith.constant 0 : index
    %c0_7 = arith.constant 0 : index
    %5 = vector.load %arg2[%c0_5, %c0_6, %c0_7] : memref<1x1x16xf32, #tpu.memory_space<vmem>>, vector<1x1x16xf32>
    %6 = vector.shape_cast %5 : vector<1x1x16xf32> to vector<1x16xf32>
    %7 = vector.broadcast %6 : vector<1x16xf32> to vector<8x16xf32>
    %8 = arith.mulf %4, %7 : vector<8x16xf32>
    %c0_8 = arith.constant 0 : index
    %c0_9 = arith.constant 0 : index
    %9 = vector.load %arg6[%c0_8, %c0_9] : memref<32x8xf32, #tpu.memory_space<vmem>>, vector<32x8xf32>
    %c0_10 = arith.constant 0 : index
    %c0_11 = arith.constant 0 : index
    %c0_12 = arith.constant 0 : index
    %10 = vector.load %arg4[%c0_10, %c0_11, %c0_12] : memref<1x8x16xf32, #tpu.memory_space<vmem>>, vector<1x8x16xf32>
    %11 = vector.shape_cast %10 : vector<1x8x16xf32> to vector<8x16xf32>
    %cst_13 = arith.constant dense<0.000000e+00> : vector<32x16xf32>
    %12 = tpu.matmul %9, %11, %cst_13 {dimension_numbers = #tpu.dot_dimension_numbers<[1], [0], [0], [1], [0, 0, 1, 1], [], []>} : vector<32x8xf32>, vector<8x16xf32>, vector<32x16xf32> -> vector<32x16xf32>
    %c0_14 = arith.constant 0 : index
    %c0_15 = arith.constant 0 : index
    %13 = vector.load %arg7[%c0_14, %c0_15] : memref<32x8xf32, #tpu.memory_space<vmem>>, vector<32x8xf32>
    %cst_16 = arith.constant dense<0.000000e+00> : vector<32x16xf32>
    %14 = tpu.matmul %13, %8, %cst_16 {dimension_numbers = #tpu.dot_dimension_numbers<[1], [0], [0], [1], [0, 0, 1, 1], [], []>} : vector<32x8xf32>, vector<8x16xf32>, vector<32x16xf32> -> vector<32x16xf32>
    %15 = arith.addf %12, %14 : vector<32x16xf32>
    %c0_17 = arith.constant 0 : index
    %c0_18 = arith.constant 0 : index
    %16 = vector.load %arg8[%c0_17, %c0_18] : memref<32x1xf32, #tpu.memory_space<vmem>>, vector<32x1xf32>
    %17 = vector.broadcast %16 : vector<32x1xf32> to vector<32x16xf32>
    %18 = arith.addf %15, %17 : vector<32x16xf32>
    %c0_19 = arith.constant 0 : index
    %c0_20 = arith.constant 0 : index
    %c0_21 = arith.constant 0 : index
    %19 = vector.load %arg9[%c0_19, %c0_20, %c0_21] : memref<1x32x16xf32, #tpu.memory_space<vmem>>, vector<1x32x16xf32>
    %20 = vector.shape_cast %19 : vector<1x32x16xf32> to vector<32x16xf32>
    %21 = vector.shape_cast %18 : vector<32x16xf32> to vector<1x32x16xf32>
    tpu.vector_store %arg9[%c0_19, %c0_20, %c0_21], %21 {strides = array<i32>} : memref<1x32x16xf32, #tpu.memory_space<vmem>>, vector<1x32x16xf32>,
    return
  }
  func.func @transform_0(%arg0: i32, %arg1: i32) -> (i32, i32, i32) {
    %c0_i32 = arith.constant 0 : i32
    %c0_i32_0 = arith.constant 0 : i32
    return %arg0, %c0_i32, %arg1 : i32, i32, i32
  }
  func.func @transform_1(%arg0: i32, %arg1: i32) -> (i32, i32, i32) {
    %c0_i32 = arith.constant 0 : i32
    %c0_i32_0 = arith.constant 0 : i32
    %c0_i32_1 = arith.constant 0 : i32
    return %arg0, %c0_i32, %c0_i32_0 : i32, i32, i32
  }
  func.func @transform_2(%arg0: i32, %arg1: i32) -> (i32, i32, i32) {
    %c0_i32 = arith.constant 0 : i32
    %c0_i32_0 = arith.constant 0 : i32
    return %arg0, %c0_i32, %arg1 : i32, i32, i32
  }
  func.func @transform_3(%arg0: i32, %arg1: i32) -> (i32, i32, i32) {
    %c0_i32 = arith.constant 0 : i32
    %c0_i32_0 = arith.constant 0 : i32
    return %arg0, %arg1, %c0_i32 : i32, i32, i32
  }
  func.func @transform_4(%arg0: i32, %arg1: i32) -> (i32, i32) {
    %c0_i32 = arith.constant 0 : i32
    %c0_i32_0 = arith.constant 0 : i32
    %c0_i32_1 = arith.constant 0 : i32
    return %c0_i32, %c0_i32_0 : i32, i32
  }
  func.func @transform_5(%arg0: i32, %arg1: i32) -> (i32, i32) {
    %c0_i32 = arith.constant 0 : i32
    %c0_i32_0 = arith.constant 0 : i32
    %c0_i32_1 = arith.constant 0 : i32
    return %c0_i32, %c0_i32_0 : i32, i32
  }
  func.func @transform_6(%arg0: i32, %arg1: i32) -> (i32, i32) {
    %c0_i32 = arith.constant 0 : i32
    %c0_i32_0 = arith.constant 0 : i32
    %c0_i32_1 = arith.constant 0 : i32
    return %c0_i32, %c0_i32_0 : i32, i32
  }
  func.func @transform_7(%arg0: i32, %arg1: i32) -> (i32, i32, i32) {
    %c0_i32 = arith.constant 0 : i32
    %c0_i32_0 = arith.constant 0 : i32
    return %arg0, %c0_i32, %arg1 : i32, i32, i32
  }
}

</mosaic_0001>

<bundles_post_ra>
// kernel: tpu_custom_call.1
= control target key start
LH: loop header
LB: loop body
LE: loop exit
PB: predicated region body
PF: predicated region fallthrough
CT: control target
= control target key end

     0   :  { %s1005_s24 = smov 0   ;;  %s1007_s25 = smov 0   ;;  %s1104_s0 = inlined_call_operand.vmem [shape: f32[2,1,16], index: 0, kind: input, shape index: {}]   ;;  %s1105_s1 = inlined_call_operand.vmem [shape: f32[2,8,16], index: 1, kind: input, shape index: {}]   ;;  %s1106_s2 = inlined_call_operand.vmem [shape: f32[2,8,16], index: 2, kind: input, shape index: {}]   ;;  %s1107_s3 = inlined_call_operand.vmem [shape: f32[2,16,16], index: 3, kind: input, shape index: {}]   ;;  %s1108_s4 = inlined_call_operand.vmem [shape: f32[32,8], index: 4, kind: input, shape index: {}]   ;;  %s1109_s5 = inlined_call_operand.vmem [shape: f32[32,8], index: 5, kind: input, shape index: {}]   ;;  %s1110_s6 = inlined_call_operand.vmem [shape: f32[32,1], index: 6, kind: input, shape index: {}]   ;;  %s1111_s7 = inlined_call_operand.vmem [shape: f32[2,32,16], index: 7, kind: output, shape index: {}]  }
   0x1   :  { %s1009_s26 = smov 0  }
   0x2 LB: > { %s29_s27 = sadd.s32 1, %s955_s25  ;;  %p838_p0 = scmp.ge.s32.totalorder %s959_s26, 1  ;;  %s959_s26 = sphi %s1009_s26, %s17_s26   ;;  %s955_s25 = sphi %s1007_s25, %s1113_s25   ;;  %s951_s24 = sphi %s1005_s24, %s1112_s24  }
   0x3   : > { %p31_p1 = scmp.ge.s32.totalorder %s29_s27, 2  ;;  %p294_p2 = scmp.lt.s32.totalorder %s959_s26, 3 }
   0x5   : > { %s1115_s27 = smov (%p31_p1, %s29_s27), 0  ;;  %p295_p3 = pnand %p838_p0, %p294_p2 }
   0x6   : > { %p350_p4 = scmp.lt.s32.totalorder (!%p295_p3), %s951_s24, 1  ;;  %v961_v0 = vmov (!%p295_p3), 0.0|0.0   ;;  %vm962_vm0 = vmmov (!%p295_p3), 0   ;;  %v963_v1 = vmov (!%p295_p3), 0.0   ;;  %vm388_vm1 = vcmask (!%p295_p3), 130048   ;;  %v483_v6 = vld [vmem:[%s1109_s5 + $0x10] sm:$0xff] (!%p295_p3) }
   0x7   : > { %298 = sbr.rel (%p295_p3) target bundleno = 467 (0x1d3), region = 48  ;;  %897 = vmatprep.subr.bf16.mxu0 (!%p295_p3), %v961_v0  ;;  %878 = vmatprep.mubr.msk.f32.mxu0 (!%p295_p3), %vm962_vm0, %v963_v1  ;;  %vm899_vm2 = vmpackc.low (!%p295_p3), %vm388_vm1, %vm388_vm1  ;;  %vm485_vm3 = vcmask (!%p295_p3), 64512   ;;  %v481_v7 = vld [vmem:[%s1109_s5] sm:$0xff] (!%p295_p3)  ;;  %v682_v8 = vld [vmem:[%s1110_s6 + $0x10] sm:$0xff] (!%p295_p3)  ;;  %v964_v10 = vmov (!%p295_p3), 0  }
   0x8   : > { %886 = vmatprep.mubr.msk.f32.mxu1 (!%p295_p3), %vm485_vm3, %v483_v6  ;;  %v680_v9 = vld [vmem:[%s1110_s6] sm:$0xff] (!%p295_p3)  ;;  %936 = vset.pattern.permute.xlu1 (!%p295_p3), %v964_v10  ;;  %v683_v11 = vld [vmem:[%s1110_s6 + $0x18] sm:$0xff] (!%p295_p3)  ;;  %v681_v12 = vld [vmem:[%s1110_s6 + $0x8] sm:$0xff] (!%p295_p3) }
   0x9   : > { %935 = vset.pattern.permute.xlu0 (!%p295_p3), %v964_v10  ;;  %696 = vperm.xlu1 (!%p295_p3), %936, %v682_v8   ;;  %v484_v17 = vld [vmem:[%s1109_s5 + $0x18] sm:$0xff] (!%p295_p3)  ;;  %v476_v19 = vld [vmem:[%s1108_s4] sm:$0xff] (!%p295_p3)  ;;  %v482_v20 = vld [vmem:[%s1109_s5 + $0x8] sm:$0xff] (!%p295_p3) }
   0xa   : > { %686 = vperm.xlu0 (!%p295_p3), %935, %v680_v9   ;;  %v477_v21 = vld [vmem:[%s1108_s4 + $0x8] sm:$0xff] (!%p295_p3)  ;;  %v478_v22 = vld [vmem:[%s1108_s4 + $0x10] sm:$0xff] (!%p295_p3)  ;;  %v479_v23 = vld [vmem:[%s1108_s4 + $0x18] sm:$0xff] (!%p295_p3) }
   0xd   : > { %701 = vperm.xlu1 (!%p295_p3), %936, %v683_v11  }
   0xe   : > { %s1117_s24 = smov (!%p350_p4, %s951_s24), 1  ;;  %691 = vperm.xlu0 %935, %v681_v12  }
   0xf   : > { %s859_s28 = sshll.u32 %s1117_s24, 4  ;;  %s839_s9 = sshll.u32 %s1117_s24, 3 }
  0x10   : > { %s375_s8 = scalar_lea.vmem %s1107_s3, %s859_s28  ;;  %s359_s12 = scalar_lea.vmem %s1105_s1, %s839_s9 }
  0x11   : > { %v386_v2 = vld [vmem:[%s375_s8] sm:$0xff]  ;;  %v387_v3 = vld [vmem:[%s375_s8 + $0x8] sm:$0xff]  ;;  %s355_s8 = scalar_lea.vmem %s1104_s0, %s1117_s24  ;;  %s860_s28 = sshll.u32 %s1117_s24, 5 }
  0x12   : > { %v898_v4 = vpack.c.bf16 %v387_v3, %v386_v2  ;;  %v385_v5 = vld [vmem:[%s359_s12] sm:$0xff]  ;;  %s366_s12 = scalar_lea.vmem %s1106_s2, %s839_s9 }
  0x13   : > { %v848_v13 = vld [vmem:[%s355_s8] ss:$0 sm:$0xff]  ;;  %s384_s8 = scalar_lea.vmem %s1111_s7, %s860_s28 }
  0x14   : > { %900 = vmatpush3.bf16.xpose.msk.msra.mxu0 %vm899_vm2, %v898_v4  ;;  %v480_v18 = vld [vmem:[%s366_s12] sm:$0xff] }
  0x1b   : > { %879 = vmatmul.mubr.msk.f32.vlgmr.msra.gmra.mrb[0].mxu0 %vm388_vm1, %v385_v5 }
  0x1c   : > { %883 = vmatprep.mubr.msk.f32.mxu0 %vm485_vm3, %v481_v7 }
  0x88   : > { %v697_v25 = vpop.permute.xlu1 %696 }
  0x89   : > { %v687_v24 = vpop.permute.xlu0 %686 }
  0x8c   : > { %v702_v35 = vpop.permute.xlu1 %701 }
  0x8d   : > { %v692_v29 = vpop.permute.xlu0 %691 }
  0xee   : > { %v464_v14 = vpop.f32.mrb[0].mxu0 }
  0xef   : > { %v475_v15 = vmul.f32 %v848_v13, %v464_v14  ;;  %v880_v16 = vpop.f32.mrb[1].mxu0 }
  0xf1   : > { %881 = vmatprep.subr.mxu0 %v475_v15  ;;  %901 = vmatprep.subr.mxu1 %v475_v15 }
  0xf2   : > { %882 = vmatpush3.msra.mxu0 %v475_v15  ;;  %902 = vmatpush3.msra.mxu1 %v475_v15 }
  0xf3   : > { %887 = vmatmul.mubr.msk.f32.vlgmr.msra.gmra.mrb[0].mxu1 %vm485_vm3, %v484_v17  ;;  %889 = vmatprep.subr.mxu1 %v480_v18 }
  0xf4   : > { %890 = vmatpush3.msra.mxu1 %v480_v18  ;;  %891 = vmatprep.mubr.msk.f32.mxu1 %vm485_vm3, %v476_v19 }
  0xf5   : > { %884 = vmatmul.mubr.msk.f32.vlgmr.msra.gmra.mrb[2].mxu0 %vm485_vm3, %v482_v20 }
  0xf7   : > { %892 = vmatmul.mubr.msk.f32.vlgmr.msra.gmra.mrb[2].mxu1 %vm485_vm3, %v477_v21 }
  0xf8   : > { %894 = vmatprep.mubr.msk.f32.mxu1 %vm485_vm3, %v478_v22 }
  0xfb   : > { %895 = vmatmul.mubr.msk.f32.gmra.mrb[0].mxu1 %vm485_vm3, %v479_v23 }
 0x1c8   : > { %v885_v26 = vpop.f32.mrb[2].mxu0 }
 0x1c9   : > { %v564_v27 = vpop.f32.mrb[3].mxu0 }
 0x1ca   : > { %v893_v28 = vpop.f32.mrb[2].mxu1 }
 0x1cb   : > { %v667_v30 = vadd.f32 %v893_v28, %v885_v26  ;;  %v661_v31 = vpop.f32.mrb[3].mxu1 }
 0x1cc   : > { %v662_v32 = vadd.f32 %v661_v31, %v564_v27 }
 0x1cd   : > { %v705_v33 = vadd.f32 %v692_v29, %v667_v30 }
 0x1ce   : > { %v704_v34 = vadd.f32 %v687_v24, %v662_v32  ;;  %v896_v36 = vpop.f32.mrb[0].mxu1 }
 0x1cf   : > { %709 = vst.msk [vmem:[%s384_s8 + $0x8] sm:$0xff] %vm388_vm1, %v705_v33  ;;  %v707_v37 = vadd.f32 %v896_v36, %v702_v35  ;;  %v671_v38 = vpop.f32.mrb[1].mxu1 }
 0x1d0   : > { %708 = vst.msk [vmem:[%s384_s8] sm:$0xff] %vm388_vm1, %v704_v34  ;;  %v706_v39 = vadd.f32 %v697_v25, %v671_v38 }
 0x1d1   : > { %711 = vst.msk [vmem:[%s384_s8 + $0x18] sm:$0xff] %vm388_vm1, %v707_v37 }
 0x1d2   : > { %710 = vst.msk [vmem:[%s384_s8 + $0x10] sm:$0xff] %vm388_vm1, %v706_v39 }
 0x1d3 PF: > { %s17_s26 = sadd.s32 1, %s959_s26   ;;  %s1112_s24 = smov %s955_s25 }
 0x1d4   : > { %p14_p5 = scmp.ge.s32.totalorder %s17_s26, 4   ;;  %s1113_s25 = smov %s1115_s27 }
 0x1d6   :  { %16 = sbr.rel (!%p14_p5) target bundleno = 2 (0x2), region = 87 }

</bundles_post_ra>
